<compile_context>
chip_gen: v7x
topology: tpu7x:2x2x1
jax: 0.10.0
libtpu: 0.0.40
codegen_flags: <defaults>
</compile_context>

<pallas_src>
import math

import jax
import jax.numpy as jnp
from jax import lax
from jax.experimental import pallas as pl
from jax.experimental.pallas import tpu as pltpu

DECAY = 0.25
LANE = 128
SUBLANE = 8
_TARGET_BLOCK_BYTES = 1 << 20  # ~1 MiB blocks: ~85% of HBM roofline on v6e.


def _mem_update_kernel(x_ref, out_ref, carry_ref):
    # x_ref / out_ref: (TQ, tr, 128) block = TQ time steps of row tile j.
    # carry_ref: (tr, 128) f32 scratch holding (mem - spike) across time.
    t_blk = pl.program_id(1)

    @pl.when(t_blk == 0)
    def _():
        carry_ref[...] = jnp.zeros_like(carry_ref)

    tq = x_ref.shape[0]

    def body(i, carry):
        # mem[i] = (mem[i-1] - spike[i-1]) * decay + x[i]; with carry == 0 at
        # i == 0 this reduces to mem[0] = x[0], matching the PyTorch branch.
        mem = carry * DECAY + x_ref[i].astype(jnp.float32)
        # MultiSpike4 forward: round(clamp(mem * 100, 0, 511)) / 100.
        # (*0.01 is the multiply form of /100; avoids the slow VPU divide.)
        spike = jnp.round(jnp.clip(mem * 100.0, 0.0, 511.0)) * 0.01
        out_ref[i] = spike.astype(out_ref.dtype)
        return mem - spike

    carry_ref[...] = lax.fori_loop(0, tq, body, carry_ref[...], unroll=True)


def _choose_tiles(T, R, itemsize):
    """Pick (tr, tq): tr a multiple of 8 dividing R, tq dividing T, with the
    (tq, tr, 128) block close to (but not above) the ~1 MiB target."""
    # Keep >= 2 row tiles when R allows so v7x's two TensorCores both get work.
    tr_cap = R if R < 2 * SUBLANE else R // 2
    tr = SUBLANE
    for cand in range(SUBLANE, tr_cap + 1, SUBLANE):
        if cand * LANE * itemsize > _TARGET_BLOCK_BYTES:
            break
        if R % cand == 0:
            tr = cand
    tq = 1
    for cand in range(1, T + 1):
        if cand * tr * LANE * itemsize > _TARGET_BLOCK_BYTES:
            break
        if T % cand == 0:
            tq = cand
    return tr, tq


@jax.jit
def mem_update(x):
    """x: (T, B, C, H, W) float -> spike output of identical shape/dtype."""
    orig_shape = x.shape
    T = orig_shape[0]
    N = math.prod(orig_shape[1:])

    chunk = SUBLANE * LANE
    N_pad = ((N + chunk - 1) // chunk) * chunk
    x_flat = x.reshape(T, N)
    if N_pad != N:
        # TODO(synk): a masked final tile would avoid this extra HBM pass;
        # it only triggers when N % 1024 != 0.
        x_flat = jnp.pad(x_flat, ((0, 0), (0, N_pad - N)))
    R = N_pad // LANE
    x3 = x_flat.reshape(T, R, LANE)

    tr, tq = _choose_tiles(T, R, x.dtype.itemsize)

    out = pl.pallas_call(
        _mem_update_kernel,
        out_shape=jax.ShapeDtypeStruct((T, R, LANE), x.dtype),
        grid_spec=pltpu.PrefetchScalarGridSpec(
            num_scalar_prefetch=0,
            grid=(R // tr, T // tq),
            in_specs=[pl.BlockSpec((tq, tr, LANE), lambda j, t: (t, j, 0))],
            out_specs=pl.BlockSpec((tq, tr, LANE), lambda j, t: (t, j, 0)),
            scratch_shapes=[pltpu.VMEM((tr, LANE), jnp.float32)],  # mem - spike
        ),
        compiler_params=pltpu.CompilerParams(
            dimension_semantics=("parallel", "arbitrary"),
            vmem_limit_bytes=32 * 1024 * 1024,
        ),
    )(x3)

    out = out.reshape(T, N_pad)
    if N_pad != N:
        out = out[:, :N]
    return out.reshape(orig_shape)


def _mem_update_ref(x):
    """Pure-JAX reference mirroring the PyTorch forward."""
    T = x.shape[0]
    mem_old = jnp.zeros_like(x[0])
    spike = jnp.zeros_like(x[0])
    outs = []
    for i in range(T):
        if i >= 1:
            mem = (mem_old - spike) * DECAY + x[i]
        else:
            mem = x[i]
        spike = jnp.round(jnp.clip(mem * 100.0, 0.0, 511.0)) * 0.01
        mem_old = mem
        outs.append(spike)
    return jnp.stack(outs, axis=0)


if __name__ == "__main__":
    key = jax.random.PRNGKey(0)

    # (T, B, C, H, W): time_window=4, batch=2, channels=4, spatial 8x16
    # -> N = 1024 exactly (no padding path).
    x = jax.random.normal(key, (4, 2, 4, 8, 16), dtype=jnp.float32) * 3.0
    out = jax.block_until_ready(mem_update(x))
    ref = _mem_update_ref(x)
    assert out.shape == x.shape
    assert jnp.allclose(out, ref, atol=1e-5, rtol=1e-5), (
        f"max abs err {jnp.max(jnp.abs(out - ref))}"
    )

    # Second case exercising the padded / multi-time-step path (N=840, T=8).
    x2 = jax.random.normal(jax.random.PRNGKey(1), (8, 2, 3, 10, 14),
                           dtype=jnp.float32) * 3.0
    out2 = jax.block_until_ready(mem_update(x2))
    ref2 = _mem_update_ref(x2)
    assert out2.shape == x2.shape
    assert jnp.allclose(out2, ref2, atol=1e-5, rtol=1e-5), (
        f"max abs err {jnp.max(jnp.abs(out2 - ref2))}"
    )

    print("KERNEL_OK")
</pallas_src>

<mosaic_0001>
module attributes {stable_mosaic.version = 11 : i64} {
  func.func @_mem_update_kernel(%arg0: i32, %arg1: i32, %arg2: memref<4x8x128xf32, #tpu.memory_space<vmem>>, %arg3: memref<4x8x128xf32, #tpu.memory_space<vmem>>, %arg4: memref<8x128xf32, #tpu.memory_space<vmem>>) attributes {dimension_semantics = [#tpu.dimension_semantics<parallel>, #tpu.dimension_semantics<arbitrary>], iteration_bounds = array<i64: 1, 1>, scalar_prefetch = 0 : i64, scratch_operands = 1 : i64, tpu.core_type = #tpu.core_type<tc>, window_params = [{transform_indices = @transform_0, window_bounds = array<i64: 4, 8, 128>}, {transform_indices = @transform_1, window_bounds = array<i64: 4, 8, 128>}]} {
    %c0_i32 = arith.constant 0 : i32
    %0 = arith.cmpi eq, %arg1, %c0_i32 : i32
    %1 = arith.extui %0 : i1 to i32
    %c0_i32_0 = arith.constant 0 : i32
    %2 = arith.cmpi ne, %1, %c0_i32_0 : i32
    scf.if %2 {
      %cst_40 = arith.constant 0.000000e+00 : f32
      %85 = vector.broadcast %cst_40 : f32 to vector<8x128xf32>
      %c0_41 = arith.constant 0 : index
      %c0_42 = arith.constant 0 : index
      %86 = vector.load %arg4[%c0_41, %c0_42] : memref<8x128xf32, #tpu.memory_space<vmem>>, vector<8x128xf32>
      tpu.vector_store %arg4[%c0_41, %c0_42], %85 {strides = array<i32>} : memref<8x128xf32, #tpu.memory_space<vmem>>, vector<8x128xf32>,
    } else {
    }
    %c0 = arith.constant 0 : index
    %c0_1 = arith.constant 0 : index
    %3 = vector.load %arg4[%c0, %c0_1] : memref<8x128xf32, #tpu.memory_space<vmem>>, vector<8x128xf32>
    %c0_i32_2 = arith.constant 0 : i32
    %cst = arith.constant 2.500000e-01 : f32
    %4 = vector.broadcast %cst : f32 to vector<8x128xf32>
    %5 = arith.mulf %3, %4 : vector<8x128xf32>
    %6 = arith.index_cast %c0_i32_2 : i32 to index
    %c0_3 = arith.constant 0 : index
    %c0_4 = arith.constant 0 : index
    %7 = vector.load %arg2[%6, %c0_3, %c0_4] : memref<4x8x128xf32, #tpu.memory_space<vmem>>, vector<1x8x128xf32>
    %8 = vector.shape_cast %7 : vector<1x8x128xf32> to vector<8x128xf32>
    %9 = arith.addf %5, %8 : vector<8x128xf32>
    %cst_5 = arith.constant 1.000000e+02 : f32
    %10 = vector.broadcast %cst_5 : f32 to vector<8x128xf32>
    %11 = arith.mulf %9, %10 : vector<8x128xf32>
    %cst_6 = arith.constant 0.000000e+00 : f32
    %cst_7 = arith.constant 5.110000e+02 : f32
    %12 = vector.broadcast %cst_6 : f32 to vector<8x128xf32>
    %13 = arith.maximumf %12, %11 : vector<8x128xf32>
    %14 = vector.broadcast %cst_7 : f32 to vector<8x128xf32>
    %15 = arith.minimumf %14, %13 : vector<8x128xf32>
    %16 = math.roundeven %15 : vector<8x128xf32>
    %cst_8 = arith.constant 0.00999999977 : f32
    %17 = vector.broadcast %cst_8 : f32 to vector<8x128xf32>
    %18 = arith.mulf %16, %17 : vector<8x128xf32>
    %19 = arith.index_cast %c0_i32_2 : i32 to index
    %c0_9 = arith.constant 0 : index
    %c0_10 = arith.constant 0 : index
    %20 = vector.load %arg3[%19, %c0_9, %c0_10] : memref<4x8x128xf32, #tpu.memory_space<vmem>>, vector<1x8x128xf32>
    %21 = vector.shape_cast %20 : vector<1x8x128xf32> to vector<8x128xf32>
    %22 = vector.shape_cast %18 : vector<8x128xf32> to vector<1x8x128xf32>
    tpu.vector_store %arg3[%19, %c0_9, %c0_10], %22 {strides = array<i32>} : memref<4x8x128xf32, #tpu.memory_space<vmem>>, vector<1x8x128xf32>,
    %23 = arith.subf %9, %18 : vector<8x128xf32>
    %c1_i32 = arith.constant 1 : i32
    %cst_11 = arith.constant 2.500000e-01 : f32
    %24 = vector.broadcast %cst_11 : f32 to vector<8x128xf32>
    %25 = arith.mulf %23, %24 : vector<8x128xf32>
    %26 = arith.index_cast %c1_i32 : i32 to index
    %c0_12 = arith.constant 0 : index
    %c0_13 = arith.constant 0 : index
    %27 = vector.load %arg2[%26, %c0_12, %c0_13] : memref<4x8x128xf32, #tpu.memory_space<vmem>>, vector<1x8x128xf32>
    %28 = vector.shape_cast %27 : vector<1x8x128xf32> to vector<8x128xf32>
    %29 = arith.addf %25, %28 : vector<8x128xf32>
    %cst_14 = arith.constant 1.000000e+02 : f32
    %30 = vector.broadcast %cst_14 : f32 to vector<8x128xf32>
    %31 = arith.mulf %29, %30 : vector<8x128xf32>
    %cst_15 = arith.constant 0.000000e+00 : f32
    %cst_16 = arith.constant 5.110000e+02 : f32
    %32 = vector.broadcast %cst_15 : f32 to vector<8x128xf32>
    %33 = arith.maximumf %32, %31 : vector<8x128xf32>
    %34 = vector.broadcast %cst_16 : f32 to vector<8x128xf32>
    %35 = arith.minimumf %34, %33 : vector<8x128xf32>
    %36 = math.roundeven %35 : vector<8x128xf32>
    %cst_17 = arith.constant 0.00999999977 : f32
    %37 = vector.broadcast %cst_17 : f32 to vector<8x128xf32>
    %38 = arith.mulf %36, %37 : vector<8x128xf32>
    %39 = arith.index_cast %c1_i32 : i32 to index
    %c0_18 = arith.constant 0 : index
    %c0_19 = arith.constant 0 : index
    %40 = vector.load %arg3[%39, %c0_18, %c0_19] : memref<4x8x128xf32, #tpu.memory_space<vmem>>, vector<1x8x128xf32>
    %41 = vector.shape_cast %40 : vector<1x8x128xf32> to vector<8x128xf32>
    %42 = vector.shape_cast %38 : vector<8x128xf32> to vector<1x8x128xf32>
    tpu.vector_store %arg3[%39, %c0_18, %c0_19], %42 {strides = array<i32>} : memref<4x8x128xf32, #tpu.memory_space<vmem>>, vector<1x8x128xf32>,
    %43 = arith.subf %29, %38 : vector<8x128xf32>
    %c2_i32 = arith.constant 2 : i32
    %cst_20 = arith.constant 2.500000e-01 : f32
    %44 = vector.broadcast %cst_20 : f32 to vector<8x128xf32>
    %45 = arith.mulf %43, %44 : vector<8x128xf32>
    %46 = arith.index_cast %c2_i32 : i32 to index
    %c0_21 = arith.constant 0 : index
    %c0_22 = arith.constant 0 : index
    %47 = vector.load %arg2[%46, %c0_21, %c0_22] : memref<4x8x128xf32, #tpu.memory_space<vmem>>, vector<1x8x128xf32>
    %48 = vector.shape_cast %47 : vector<1x8x128xf32> to vector<8x128xf32>
    %49 = arith.addf %45, %48 : vector<8x128xf32>
    %cst_23 = arith.constant 1.000000e+02 : f32
    %50 = vector.broadcast %cst_23 : f32 to vector<8x128xf32>
    %51 = arith.mulf %49, %50 : vector<8x128xf32>
    %cst_24 = arith.constant 0.000000e+00 : f32
    %cst_25 = arith.constant 5.110000e+02 : f32
    %52 = vector.broadcast %cst_24 : f32 to vector<8x128xf32>
    %53 = arith.maximumf %52, %51 : vector<8x128xf32>
    %54 = vector.broadcast %cst_25 : f32 to vector<8x128xf32>
    %55 = arith.minimumf %54, %53 : vector<8x128xf32>
    %56 = math.roundeven %55 : vector<8x128xf32>
    %cst_26 = arith.constant 0.00999999977 : f32
    %57 = vector.broadcast %cst_26 : f32 to vector<8x128xf32>
    %58 = arith.mulf %56, %57 : vector<8x128xf32>
    %59 = arith.index_cast %c2_i32 : i32 to index
    %c0_27 = arith.constant 0 : index
    %c0_28 = arith.constant 0 : index
    %60 = vector.load %arg3[%59, %c0_27, %c0_28] : memref<4x8x128xf32, #tpu.memory_space<vmem>>, vector<1x8x128xf32>
    %61 = vector.shape_cast %60 : vector<1x8x128xf32> to vector<8x128xf32>
    %62 = vector.shape_cast %58 : vector<8x128xf32> to vector<1x8x128xf32>
    tpu.vector_store %arg3[%59, %c0_27, %c0_28], %62 {strides = array<i32>} : memref<4x8x128xf32, #tpu.memory_space<vmem>>, vector<1x8x128xf32>,
    %63 = arith.subf %49, %58 : vector<8x128xf32>
    %c3_i32 = arith.constant 3 : i32
    %cst_29 = arith.constant 2.500000e-01 : f32
    %64 = vector.broadcast %cst_29 : f32 to vector<8x128xf32>
    %65 = arith.mulf %63, %64 : vector<8x128xf32>
    %66 = arith.index_cast %c3_i32 : i32 to index
    %c0_30 = arith.constant 0 : index
    %c0_31 = arith.constant 0 : index
    %67 = vector.load %arg2[%66, %c0_30, %c0_31] : memref<4x8x128xf32, #tpu.memory_space<vmem>>, vector<1x8x128xf32>
    %68 = vector.shape_cast %67 : vector<1x8x128xf32> to vector<8x128xf32>
    %69 = arith.addf %65, %68 : vector<8x128xf32>
    %cst_32 = arith.constant 1.000000e+02 : f32
    %70 = vector.broadcast %cst_32 : f32 to vector<8x128xf32>
    %71 = arith.mulf %69, %70 : vector<8x128xf32>
    %cst_33 = arith.constant 0.000000e+00 : f32
    %cst_34 = arith.constant 5.110000e+02 : f32
    %72 = vector.broadcast %cst_33 : f32 to vector<8x128xf32>
    %73 = arith.maximumf %72, %71 : vector<8x128xf32>
    %74 = vector.broadcast %cst_34 : f32 to vector<8x128xf32>
    %75 = arith.minimumf %74, %73 : vector<8x128xf32>
    %76 = math.roundeven %75 : vector<8x128xf32>
    %cst_35 = arith.constant 0.00999999977 : f32
    %77 = vector.broadcast %cst_35 : f32 to vector<8x128xf32>
    %78 = arith.mulf %76, %77 : vector<8x128xf32>
    %79 = arith.index_cast %c3_i32 : i32 to index
    %c0_36 = arith.constant 0 : index
    %c0_37 = arith.constant 0 : index
    %80 = vector.load %arg3[%79, %c0_36, %c0_37] : memref<4x8x128xf32, #tpu.memory_space<vmem>>, vector<1x8x128xf32>
    %81 = vector.shape_cast %80 : vector<1x8x128xf32> to vector<8x128xf32>
    %82 = vector.shape_cast %78 : vector<8x128xf32> to vector<1x8x128xf32>
    tpu.vector_store %arg3[%79, %c0_36, %c0_37], %82 {strides = array<i32>} : memref<4x8x128xf32, #tpu.memory_space<vmem>>, vector<1x8x128xf32>,
    %83 = arith.subf %69, %78 : vector<8x128xf32>
    %c4_i32 = arith.constant 4 : i32
    %c0_38 = arith.constant 0 : index
    %c0_39 = arith.constant 0 : index
    %84 = vector.load %arg4[%c0_38, %c0_39] : memref<8x128xf32, #tpu.memory_space<vmem>>, vector<8x128xf32>
    tpu.vector_store %arg4[%c0_38, %c0_39], %83 {strides = array<i32>} : memref<8x128xf32, #tpu.memory_space<vmem>>, vector<8x128xf32>,
    return
  }
  func.func @transform_0(%arg0: i32, %arg1: i32) -> (i32, i32, i32) {
    %c0_i32 = arith.constant 0 : i32
    %c0_i32_0 = arith.constant 0 : i32
    return %arg1, %arg0, %c0_i32 : i32, i32, i32
  }
  func.func @transform_1(%arg0: i32, %arg1: i32) -> (i32, i32, i32) {
    %c0_i32 = arith.constant 0 : i32
    %c0_i32_0 = arith.constant 0 : i32
    return %arg1, %arg0, %c0_i32 : i32, i32, i32
  }
}

</mosaic_0001>

<bundles_post_ra>
// kernel: mem_update.1
= control target key start
LH: loop header
LB: loop body
LE: loop exit
PB: predicated region body
PF: predicated region fallthrough
CT: control target
= control target key end

     0   :  { %s109_s0 = inlined_call_operand.vmem [shape: f32[4,8,128], index: 0, kind: input, shape index: {}]   ;;  %s110_s1 = inlined_call_operand.vmem [shape: f32[4,8,128], index: 1, kind: output, shape index: {}]  }
   0x1   :  { %v15_v0 = vld [vmem:[%s109_s0] sm:$0xff]  ;;  %v65_v7 = vld [vmem:[%s109_s0 + $0x8] sm:$0xff]  ;;  %v67_v16 = vld [vmem:[%s109_s0 + $0x10] sm:$0xff] }
   0x2   :  { %v17_v1 = vmul.f32 100.0, %v15_v0  ;;  %v69_v25 = vld [vmem:[%s109_s0 + $0x18] sm:$0xff] }
   0x4   :  { %v18_v2 = vmax.f32 %v17_v1, 0.0 }
   0x6   :  { %v19_v3 = vmin.f32 %v18_v2, 511.0 }
   0x8   :  { %v71_v4 = vround.rtne.f32 %v19_v3 }
   0xa   :  { %v21_v5 = vmul.f32 0.01, %v71_v4 }
   0xc   :  { %22 = vst [vmem:[%s110_s1] sm:$0xff] %v21_v5  ;;  %v23_v6 = vsub.f32 %v15_v0, %v21_v5 }
   0xe   :  { %v24_v8 = vmul.f32 0.25, %v23_v6 }
  0x10   :  { %v27_v9 = vadd.f32 %v65_v7, %v24_v8 }
  0x12   :  { %v28_v10 = vmul.f32 100.0, %v27_v9 }
  0x14   :  { %v29_v11 = vmax.f32 %v28_v10, 0.0 }
  0x16   :  { %v30_v12 = vmin.f32 %v29_v11, 511.0 }
  0x18   :  { %v72_v13 = vround.rtne.f32 %v30_v12 }
  0x1a   :  { %v32_v14 = vmul.f32 0.01, %v72_v13 }
  0x1c   :  { %66 = vst [vmem:[%s110_s1 + $0x8] sm:$0xff] %v32_v14  ;;  %v35_v15 = vsub.f32 %v27_v9, %v32_v14 }
  0x1e   :  { %v36_v17 = vmul.f32 0.25, %v35_v15 }
  0x20   :  { %v39_v18 = vadd.f32 %v67_v16, %v36_v17 }
  0x22   :  { %v40_v19 = vmul.f32 100.0, %v39_v18 }
  0x24   :  { %v41_v20 = vmax.f32 %v40_v19, 0.0 }
  0x26   :  { %v42_v21 = vmin.f32 %v41_v20, 511.0 }
  0x28   :  { %v73_v22 = vround.rtne.f32 %v42_v21 }
  0x2a   :  { %v44_v23 = vmul.f32 0.01, %v73_v22 }
  0x2c   :  { %68 = vst [vmem:[%s110_s1 + $0x10] sm:$0xff] %v44_v23  ;;  %v47_v24 = vsub.f32 %v39_v18, %v44_v23 }
  0x2e   :  { %v48_v26 = vmul.f32 0.25, %v47_v24 }
  0x30   :  { %v51_v27 = vadd.f32 %v69_v25, %v48_v26 }
  0x32   :  { %v52_v28 = vmul.f32 100.0, %v51_v27 }
  0x34   :  { %v53_v29 = vmax.f32 %v52_v28, 0.0 }
  0x36   :  { %v54_v30 = vmin.f32 %v53_v29, 511.0 }
  0x38   :  { %v74_v31 = vround.rtne.f32 %v54_v30 }
  0x3a   :  { %v56_v32 = vmul.f32 0.01, %v74_v31 }
  0x3c   :  { %70 = vst [vmem:[%s110_s1 + $0x18] sm:$0xff] %v56_v32 }

</bundles_post_ra>
